<compile_context>
chip_gen: v6e
topology: v6e:2x2x1
jax: 0.10.0
libtpu: 0.0.40
codegen_flags: <defaults>
</compile_context>

<pallas_src>
import functools

import jax
import jax.numpy as jnp
from jax.experimental import pallas as pl
from jax.experimental.pallas import tpu as pltpu


def _round_up(x, m):
    return ((x + m - 1) // m) * m


# Fixed ordering of the 12 fused parameter tensors inside the weight slab.
_SLAB_ORDER = ("w1", "b1", "w2", "b2", "w3", "b3",
               "wf1", "bf1", "wf2", "bf2", "wf3", "bf3")


def _fuse_branch_params(params):
    """Block-diagonally fuse MLP4mut and MLP4MACCS layer-by-layer."""
    def blkdiag(a, b):
        a = jnp.asarray(a, jnp.float32)
        b = jnp.asarray(b, jnp.float32)
        out = jnp.zeros((a.shape[0] + b.shape[0], a.shape[1] + b.shape[1]),
                        jnp.float32)
        out = out.at[:a.shape[0], :a.shape[1]].set(a)
        out = out.at[a.shape[0]:, a.shape[1]:].set(b)
        return out

    fused = {}
    for i in (1, 2, 3):
        fused[f"w{i}"] = blkdiag(params[f"wm{i}"], params[f"wd{i}"])
        fused[f"b{i}"] = jnp.concatenate(
            [jnp.asarray(params[f"bm{i}"], jnp.float32).reshape(-1),
             jnp.asarray(params[f"bd{i}"], jnp.float32).reshape(-1)])[None, :]
    fused["wf1"] = jnp.asarray(params["wf1"], jnp.float32)
    fused["bf1"] = jnp.asarray(params["bf1"], jnp.float32).reshape(1, -1)
    fused["wf2"] = jnp.asarray(params["wf2"], jnp.float32)
    fused["bf2"] = jnp.asarray(params["bf2"], jnp.float32).reshape(1, -1)
    # Final Linear(dense, 1) stored as a (1, dense) row (PyTorch weight layout).
    fused["wf3"] = jnp.asarray(params["wf3"], jnp.float32).reshape(1, -1)
    fused["bf3"] = jnp.asarray(params["bf3"], jnp.float32).reshape(1, 1)
    return fused


def _pack_param_slab(fused):
    """Pack all fused params into one lane-padded f32 slab + static layout."""
    lane = max(128, _round_up(max(int(a.shape[1]) for a in fused.values()), 128))
    layout, row = {}, 0
    for name in _SLAB_ORDER:
        a = fused[name]
        layout[name] = (row, int(a.shape[0]), int(a.shape[1]))
        row += _round_up(int(a.shape[0]), 8)      # keep every slice 8-row aligned
    slab = jnp.zeros((max(8, _round_up(row, 8)), lane), jnp.float32)
    for name in _SLAB_ORDER:
        a = fused[name]
        r0, r, c = layout[name]
        slab = slab.at[r0:r0 + r, :c].set(a.astype(jnp.float32))
    return slab, layout


def _make_kernel(layout):
    """Kernel for one batch tile: packed [mut|drug] input, one weight slab."""
    def kernel(x_ref, w_ref, o_ref):
        f32 = jnp.float32
        relu = lambda v: jnp.maximum(v, 0.0)
        # Default matmul precision (single pass) + f32 accumulation.
        dot = functools.partial(jnp.dot, preferred_element_type=f32)

        def p(name):
            r0, rows, cols = layout[name]
            return w_ref[r0:r0 + rows, 0:cols]      # static slice of the slab

        x = x_ref[...].astype(f32)                  # (tile, num_mut + num_drug)

        # Fused branch MLPs (block-diagonal weights): columns stay [mut | drug].
        h = relu(dot(x, p("w1")) + p("b1"))
        h = relu(dot(h, p("w2")) + p("b2"))
        h = relu(dot(h, p("w3")) + p("b3"))         # == [mut_embed | drug_embed]

        # model_final_add on the (already concatenated) embedding.
        f = relu(dot(h, p("wf1")) + p("bf1"))
        f = relu(dot(f, p("wf2")) + p("bf2"))

        # Final Linear(dense, 1) + sigmoid, produced lane-dense as (1, tile).
        logit = jax.lax.dot_general(p("wf3"), f, (((1,), (1,)), ((), ())),
                                    preferred_element_type=f32) + p("bf3")
        o_ref[...] = jax.nn.sigmoid(logit).astype(o_ref.dtype)

    return kernel


def mut_drug_forward(mut, drug, params, *, row_tile=1024):
    """mut: (B, num_mut), drug: (B, num_drug). Returns (B, 1)."""
    B, num_mut = mut.shape
    _, num_drug = drug.shape
    feat = num_mut + num_drug

    # Host-side packing: one lane-dense activation input, one weight slab.
    x = jnp.concatenate([mut.astype(jnp.float32), drug.astype(jnp.float32)],
                        axis=1)
    slab, layout = _pack_param_slab(_fuse_branch_params(params))

    # Batch tiling: big tiles (multiple of 128 so the lane-dense output block
    # is legal), and >=2 grid steps whenever the batch allows it so the
    # "parallel" axis can shard across both v7x TensorCores.
    row_tile = max(128, _round_up(int(row_tile), 128))
    padded_b = _round_up(B, 8)
    tile = min(row_tile, max(128, _round_up(pl.cdiv(B, 2), 128)))
    if tile >= padded_b:            # batch too small to split into 128-row tiles
        tile = padded_b
    num_tiles = pl.cdiv(B, tile)

    # Advisory cost estimate for XLA's scheduler around the custom call.
    flops = sum(2 * B * layout[n][1] * layout[n][2]
                for n in _SLAB_ORDER if n.startswith("w"))
    cost = pl.CostEstimate(flops=int(flops), transcendentals=int(B),
                           bytes_accessed=int(4 * (x.size + slab.size + B)))

    # VMEM budget sized from the actual buffers (double-buffered input/output,
    # resident weight slab, headroom for activations), clamped to stay under
    # every generation's physical VMEM.
    act_lanes = max(128, _round_up(max(layout[n][2] for n in _SLAB_ORDER), 128))
    vmem_bytes = 4 * (2 * tile * feat + 2 * int(slab.size)
                      + 2 * num_tiles * tile + 8 * tile * act_lanes)
    vmem_limit = int(min(max(vmem_bytes, 16 * 1024 * 1024), 64 * 1024 * 1024))

    out = pl.pallas_call(
        _make_kernel(layout),
        out_shape=jax.ShapeDtypeStruct((1, num_tiles * tile), mut.dtype),
        grid_spec=pltpu.PrefetchScalarGridSpec(
            num_scalar_prefetch=0,
            grid=(num_tiles,),
            in_specs=[pl.BlockSpec((tile, feat), lambda i: (i, 0)),
                      pl.BlockSpec(slab.shape, lambda i: (0, 0))],
            out_specs=pl.BlockSpec((1, tile), lambda i: (0, i))),
        compiler_params=pltpu.CompilerParams(
            dimension_semantics=("parallel",),
            vmem_limit_bytes=vmem_limit),
        cost_estimate=cost,
    )(x, slab)

    # Lane-dense kernel output -> (B, 1); padded tail rows are discarded here.
    return out[0, :B].reshape(B, 1)


if __name__ == "__main__":
    key = jax.random.PRNGKey(0)

    # Small shapes consistent with the module's forward.
    num_mut_features, num_drug_features = 64, 32
    mut_encode_dim = (32, 32, 16)
    drug_encode_dim = (32, 32, 16)
    dense_layer_dim = 32

    def kaiming_uniform(k, fan_in, fan_out):
        bound = (6.0 / fan_in) ** 0.5
        return jax.random.uniform(k, (fan_in, fan_out), jnp.float32,
                                  minval=-bound, maxval=bound)

    def linear_default_bias(k, fan_in, n):
        bound = 1.0 / (fan_in ** 0.5)
        return jax.random.uniform(k, (n,), jnp.float32,
                                  minval=-bound, maxval=bound)

    keys = iter(jax.random.split(key, 32))
    params = {}
    dims_mut = (num_mut_features,) + mut_encode_dim
    dims_drug = (num_drug_features,) + drug_encode_dim

    # MLP4mut (default nn.Linear-style small random biases).
    for idx in range(3):
        fi, fo = dims_mut[idx], dims_mut[idx + 1]
        params[f"wm{idx + 1}"] = kaiming_uniform(next(keys), fi, fo)
        params[f"bm{idx + 1}"] = linear_default_bias(next(keys), fi, fo)
    # MLP4MACCS (kaiming weights, zero biases as in the module).
    for idx in range(3):
        fi, fo = dims_drug[idx], dims_drug[idx + 1]
        params[f"wd{idx + 1}"] = kaiming_uniform(next(keys), fi, fo)
        params[f"bd{idx + 1}"] = jnp.zeros((fo,), jnp.float32)
    # model_final_add (kaiming weights, zero biases).
    final_in = mut_encode_dim[-1] + drug_encode_dim[-1]
    params["wf1"] = kaiming_uniform(next(keys), final_in, dense_layer_dim)
    params["bf1"] = jnp.zeros((dense_layer_dim,), jnp.float32)
    params["wf2"] = kaiming_uniform(next(keys), dense_layer_dim, dense_layer_dim)
    params["bf2"] = jnp.zeros((dense_layer_dim,), jnp.float32)
    params["wf3"] = kaiming_uniform(next(keys), dense_layer_dim, 1)
    params["bf3"] = jnp.zeros((1,), jnp.float32)

    # Pure-JAX reference with the original (unfused) PyTorch forward semantics,
    # computed at full f32 matmul precision.
    def reference(mut, drug):
        hp = functools.partial(jnp.dot, precision=jax.lax.Precision.HIGHEST)
        relu = lambda v: jnp.maximum(v, 0.0)
        m = relu(hp(mut, params["wm1"]) + params["bm1"])
        m = relu(hp(m, params["wm2"]) + params["bm2"])
        m = relu(hp(m, params["wm3"]) + params["bm3"])
        d = relu(hp(drug, params["wd1"]) + params["bd1"])
        d = relu(hp(d, params["wd2"]) + params["bd2"])
        d = relu(hp(d, params["wd3"]) + params["bd3"])
        cat = jnp.concatenate([m, d], axis=1)
        f = relu(hp(cat, params["wf1"]) + params["bf1"])
        f = relu(hp(f, params["wf2"]) + params["bf2"])
        return jax.nn.sigmoid(hp(f, params["wf3"]) + params["bf3"])

    # Check a tiny single-tile batch and a batch that exercises the multi-tile
    # grid with a ragged last tile + padded-output slicing.
    for batch in (8, 200):
        km, kd = jax.random.split(next(keys))
        mut = jax.random.normal(km, (batch, num_mut_features), jnp.float32)
        drug = (jax.random.uniform(kd, (batch, num_drug_features)) > 0.5
                ).astype(jnp.float32)

        out = jax.block_until_ready(mut_drug_forward(mut, drug, params))
        ref = reference(mut, drug)

        assert out.shape == (batch, 1) and out.dtype == mut.dtype
        max_err = float(jnp.max(jnp.abs(out - ref)))
        # Kernel runs at default (single-pass) matmul precision; tolerance is
        # sized for bf16 rounding through 6 tiny layers + sigmoid.
        assert max_err < 5e-2, f"batch={batch} max_err={max_err}"

    print("KERNEL_OK")
</pallas_src>

<mosaic_0001>
module attributes {stable_mosaic.version = 11 : i64} {
  func.func @kernel(%arg0: i32, %arg1: memref<8x96xf32, #tpu.memory_space<vmem>>, %arg2: memref<344x128xf32, #tpu.memory_space<vmem>>, %arg3: memref<1x8xf32, #tpu.memory_space<vmem>>) attributes {dimension_semantics = [#tpu.dimension_semantics<parallel>], iteration_bounds = array<i64: 1>, scalar_prefetch = 0 : i64, scratch_operands = 0 : i64, tpu.core_type = #tpu.core_type<tc>, window_params = [{transform_indices = @transform_0, window_bounds = array<i64: 8, 96>}, {pipeline_mode = #tpu.pipeline_mode<synchronous>, transform_indices = @transform_1, window_bounds = array<i64: 344, 128>}, {transform_indices = @transform_2, window_bounds = array<i64: 1, 8>}]} {
    %c0 = arith.constant 0 : index
    %c0_0 = arith.constant 0 : index
    %0 = vector.load %arg1[%c0, %c0_0] : memref<8x96xf32, #tpu.memory_space<vmem>>, vector<8x96xf32>
    %c0_1 = arith.constant 0 : index
    %c0_2 = arith.constant 0 : index
    %1 = vector.load %arg2[%c0_1, %c0_2] : memref<344x128xf32, #tpu.memory_space<vmem>>, vector<96x64xf32>
    %cst = arith.constant dense<0.000000e+00> : vector<8x64xf32>
    %2 = tpu.matmul %0, %1, %cst {dimension_numbers = #tpu.dot_dimension_numbers<[1], [0], [0], [1], [0, 0, 1, 1], [], []>} : vector<8x96xf32>, vector<96x64xf32>, vector<8x64xf32> -> vector<8x64xf32>
    %c96 = arith.constant 96 : index
    %c0_3 = arith.constant 0 : index
    %3 = vector.load %arg2[%c96, %c0_3] : memref<344x128xf32, #tpu.memory_space<vmem>>, vector<1x64xf32>
    %4 = vector.broadcast %3 : vector<1x64xf32> to vector<8x64xf32>
    %5 = arith.addf %2, %4 : vector<8x64xf32>
    %cst_4 = arith.constant 0.000000e+00 : f32
    %6 = vector.broadcast %cst_4 : f32 to vector<8x64xf32>
    %7 = arith.maximumf %5, %6 : vector<8x64xf32>
    %c104 = arith.constant 104 : index
    %c0_5 = arith.constant 0 : index
    %8 = vector.load %arg2[%c104, %c0_5] : memref<344x128xf32, #tpu.memory_space<vmem>>, vector<64x64xf32>
    %cst_6 = arith.constant dense<0.000000e+00> : vector<8x64xf32>
    %9 = tpu.matmul %7, %8, %cst_6 {dimension_numbers = #tpu.dot_dimension_numbers<[1], [0], [0], [1], [0, 0, 1, 1], [], []>} : vector<8x64xf32>, vector<64x64xf32>, vector<8x64xf32> -> vector<8x64xf32>
    %c168 = arith.constant 168 : index
    %c0_7 = arith.constant 0 : index
    %10 = vector.load %arg2[%c168, %c0_7] : memref<344x128xf32, #tpu.memory_space<vmem>>, vector<1x64xf32>
    %11 = vector.broadcast %10 : vector<1x64xf32> to vector<8x64xf32>
    %12 = arith.addf %9, %11 : vector<8x64xf32>
    %cst_8 = arith.constant 0.000000e+00 : f32
    %13 = vector.broadcast %cst_8 : f32 to vector<8x64xf32>
    %14 = arith.maximumf %12, %13 : vector<8x64xf32>
    %c176 = arith.constant 176 : index
    %c0_9 = arith.constant 0 : index
    %15 = vector.load %arg2[%c176, %c0_9] : memref<344x128xf32, #tpu.memory_space<vmem>>, vector<64x32xf32>
    %cst_10 = arith.constant dense<0.000000e+00> : vector<8x32xf32>
    %16 = tpu.matmul %14, %15, %cst_10 {dimension_numbers = #tpu.dot_dimension_numbers<[1], [0], [0], [1], [0, 0, 1, 1], [], []>} : vector<8x64xf32>, vector<64x32xf32>, vector<8x32xf32> -> vector<8x32xf32>
    %c240 = arith.constant 240 : index
    %c0_11 = arith.constant 0 : index
    %17 = vector.load %arg2[%c240, %c0_11] : memref<344x128xf32, #tpu.memory_space<vmem>>, vector<1x32xf32>
    %18 = vector.broadcast %17 : vector<1x32xf32> to vector<8x32xf32>
    %19 = arith.addf %16, %18 : vector<8x32xf32>
    %cst_12 = arith.constant 0.000000e+00 : f32
    %20 = vector.broadcast %cst_12 : f32 to vector<8x32xf32>
    %21 = arith.maximumf %19, %20 : vector<8x32xf32>
    %c248 = arith.constant 248 : index
    %c0_13 = arith.constant 0 : index
    %22 = vector.load %arg2[%c248, %c0_13] : memref<344x128xf32, #tpu.memory_space<vmem>>, vector<32x32xf32>
    %cst_14 = arith.constant dense<0.000000e+00> : vector<8x32xf32>
    %23 = tpu.matmul %21, %22, %cst_14 {dimension_numbers = #tpu.dot_dimension_numbers<[1], [0], [0], [1], [0, 0, 1, 1], [], []>} : vector<8x32xf32>, vector<32x32xf32>, vector<8x32xf32> -> vector<8x32xf32>
    %c280 = arith.constant 280 : index
    %c0_15 = arith.constant 0 : index
    %24 = vector.load %arg2[%c280, %c0_15] : memref<344x128xf32, #tpu.memory_space<vmem>>, vector<1x32xf32>
    %25 = vector.broadcast %24 : vector<1x32xf32> to vector<8x32xf32>
    %26 = arith.addf %23, %25 : vector<8x32xf32>
    %cst_16 = arith.constant 0.000000e+00 : f32
    %27 = vector.broadcast %cst_16 : f32 to vector<8x32xf32>
    %28 = arith.maximumf %26, %27 : vector<8x32xf32>
    %c288 = arith.constant 288 : index
    %c0_17 = arith.constant 0 : index
    %29 = vector.load %arg2[%c288, %c0_17] : memref<344x128xf32, #tpu.memory_space<vmem>>, vector<32x32xf32>
    %cst_18 = arith.constant dense<0.000000e+00> : vector<8x32xf32>
    %30 = tpu.matmul %28, %29, %cst_18 {dimension_numbers = #tpu.dot_dimension_numbers<[1], [0], [0], [1], [0, 0, 1, 1], [], []>} : vector<8x32xf32>, vector<32x32xf32>, vector<8x32xf32> -> vector<8x32xf32>
    %c320 = arith.constant 320 : index
    %c0_19 = arith.constant 0 : index
    %31 = vector.load %arg2[%c320, %c0_19] : memref<344x128xf32, #tpu.memory_space<vmem>>, vector<1x32xf32>
    %32 = vector.broadcast %31 : vector<1x32xf32> to vector<8x32xf32>
    %33 = arith.addf %30, %32 : vector<8x32xf32>
    %cst_20 = arith.constant 0.000000e+00 : f32
    %34 = vector.broadcast %cst_20 : f32 to vector<8x32xf32>
    %35 = arith.maximumf %33, %34 : vector<8x32xf32>
    %c328 = arith.constant 328 : index
    %c0_21 = arith.constant 0 : index
    %36 = vector.load %arg2[%c328, %c0_21] : memref<344x128xf32, #tpu.memory_space<vmem>>, vector<1x32xf32>
    %cst_22 = arith.constant dense<0.000000e+00> : vector<1x8xf32>
    %37 = tpu.matmul %36, %35, %cst_22 {dimension_numbers = #tpu.dot_dimension_numbers<[1], [1], [0], [0], [0, 0, 1, 0], [], []>} : vector<1x32xf32>, vector<8x32xf32>, vector<1x8xf32> -> vector<1x8xf32>
    %c336 = arith.constant 336 : index
    %c0_23 = arith.constant 0 : index
    %38 = vector.load %arg2[%c336, %c0_23] : memref<344x128xf32, #tpu.memory_space<vmem>>, vector<1x1xf32>
    %39 = vector.broadcast %38 : vector<1x1xf32> to vector<1x8xf32>
    %40 = arith.addf %37, %39 : vector<1x8xf32>
    %41 = arith.negf %40 : vector<1x8xf32>
    %42 = math.exp %41 : vector<1x8xf32>
    %cst_24 = arith.constant 1.000000e+00 : f32
    %43 = vector.broadcast %cst_24 : f32 to vector<1x8xf32>
    %44 = arith.addf %43, %42 : vector<1x8xf32>
    %45 = arith.divf %43, %44 : vector<1x8xf32>
    %c0_25 = arith.constant 0 : index
    %c0_26 = arith.constant 0 : index
    %46 = vector.load %arg3[%c0_25, %c0_26] : memref<1x8xf32, #tpu.memory_space<vmem>>, vector<1x8xf32>
    tpu.vector_store %arg3[%c0_25, %c0_26], %45 {strides = array<i32>} : memref<1x8xf32, #tpu.memory_space<vmem>>, vector<1x8xf32>,
    return
  }
  func.func @transform_0(%arg0: i32) -> (i32, i32) {
    %c0_i32 = arith.constant 0 : i32
    %c0_i32_0 = arith.constant 0 : i32
    return %arg0, %c0_i32 : i32, i32
  }
  func.func @transform_1(%arg0: i32) -> (i32, i32) {
    %c0_i32 = arith.constant 0 : i32
    %c0_i32_0 = arith.constant 0 : i32
    %c0_i32_1 = arith.constant 0 : i32
    return %c0_i32, %c0_i32_0 : i32, i32
  }
  func.func @transform_2(%arg0: i32) -> (i32, i32) {
    %c0_i32 = arith.constant 0 : i32
    %c0_i32_0 = arith.constant 0 : i32
    return %c0_i32, %arg0 : i32, i32
  }
}

</mosaic_0001>

<bundles_post_ra>
// kernel: tpu_custom_call.1
= control target key start
LH: loop header
LB: loop body
LE: loop exit
PB: predicated region body
PF: predicated region fallthrough
CT: control target
= control target key end

     0   :  { %7 = vsyncpa [#allocation3], 0  ;;  %s894_s0 = inlined_call_operand.hbm [shape: f32[8,96], index: 0, kind: input, shape index: {}]   ;;  %s895_s1 = inlined_call_operand.hbm [shape: f32[344,128], index: 1, kind: input, shape index: {}]   ;;  %s896_s2 = inlined_call_operand.hbm [shape: f32[1,8], index: 2, kind: output, shape index: {}]  }
   0x1   :  { %8 = vsyncpa [#allocation6], 0 }
   0x2   :  { %9 = vsyncpa [#allocation4], 0  ;;  %s807_s9 = smov [#allocation2]   ;;  %s808_s11 = smov [#allocation5]  }
   0x3   :  { %s16_s10 = sshll.u32 %s807_s9, 4  ;;  %s25_s12 = sshll.u32 %s808_s11, 4  ;;  %s17_s10 = int_to_ptr.vmem [resolvable:$true] %s16_s10  ;;  %s26_s12 = int_to_ptr.vmem [resolvable:$true] %s25_s12 }
   0x4   :  { %s749_s13 = scalar_lea.vmem %s17_s10, 128  ;;  %p754_p1 = scmp.lt.s32.totalorder %s17_s10, %s17_s10 }
   0x5   :  { %p750_p0 = scmp.ne.s32.totalorder %s17_s10, %s749_s13  ;;  %p755_p2 = scmp.lt.s32.totalorder %s749_s13, %s749_s13 }
   0x7   :  { %p756_p3 = por %p755_p2, %p754_p1 }
   0x9   :  { %p757_p4 = pnand %p756_p3, %p750_p0 }
   0xb   :  { %760 = shalt.err (!%p757_p4)
}
   0xc   :  { %19 = dma.hbm_to_vmem [thread:$0]  %s894_s0, 128, %s17_s10, [#allocation3]  }
   0xd   :  { %s769_s16 = scalar_lea.vmem %s26_s12, 5504  ;;  %p774_p6 = scmp.lt.s32.totalorder %s26_s12, %s26_s12 }
   0xe   :  { %p770_p5 = scmp.ne.s32.totalorder %s26_s12, %s769_s16  ;;  %p775_p7 = scmp.lt.s32.totalorder %s769_s16, %s769_s16 }
  0x10   :  { %p776_p8 = por %p775_p7, %p774_p6 }
  0x12   :  { %p777_p9 = pnand %p776_p8, %p770_p5 }
  0x14   :  { %780 = shalt.err (!%p777_p9)
}
  0x15   :  { %s809_s17 = smov 128   ;;  %s810_s18 = smov 8  }
  0x16   :  { %31 = dma.hbm_to_vmem [thread:$0]  %s895_s1, 5504, %s26_s12, [#allocation6], %s809_s17, %s809_s17, %s810_s18  }
  0x17   :  { %801 = dma.done.wait [#allocation3], 128  }
  0x18   :  { %802 = vsyncadd [#allocation3], 4294967168 }
  0x19   :  { %803 = dma.done.wait [#allocation6], 5504  }
  0x1a   :  { %804 = vsyncadd [#allocation6], 4294961792  ;;  %v811_v0 = vmov 0.0   ;;  %vm812_vm0 = vmmov 0   ;;  %v50_v1 = vld [vmem:[#allocation5 + $0x58] sm:$0xff]  ;;  %v49_v2 = vld [vmem:[#allocation5 + $0x50] sm:$0xff] }
  0x1b   :  { %636 = vmatprep.subr.mxu0 %v811_v0  ;;  %660 = vmatprep.mubr.msk.f32.mxu0 %vm812_vm0, %v811_v0  ;;  %v48_v3 = vld [vmem:[#allocation5 + $0x48] sm:$0xff]  ;;  %v47_v4 = vld [vmem:[#allocation5 + $0x40] sm:$0xff]  ;;  %v137_v6 = vld [vmem:[#allocation5 + $0x98] sm:$0xff]  ;;  %vm56_vm1 = vcmask 785408   ;;  %vm144_vm2 = vcmask 523264   ;;  %vm315_vm3 = vcmask 261120  }
  0x1c   :  { %663 = vmatprep.subr.mxu1 %v811_v0  ;;  %679 = vmatprep.mubr.msk.f32.mxu1 %vm812_vm0, %v811_v0  ;;  %v138_v5 = vld [vmem:[#allocation5 + $0xa0] sm:$0xff]  ;;  %v46_v7 = vld [vmem:[#allocation5 + $0x38] sm:$0xff]  ;;  %v136_v8 = vld [vmem:[#allocation5 + $0x90] sm:$0xff]  ;;  %v813_v59 = vmov 0   ;;  %s814_s0 = smov [#allocation7]   ;;  %vm562_vm4 = vcmask 57344  }
  0x1d   :  { %637 = vmatpush3.msra.mxu0 %v50_v1  ;;  %664 = vmatpush3.msra.mxu1 %v138_v5  ;;  %v45_v9 = vld [vmem:[#allocation5 + $0x30] sm:$0xff]  ;;  %v135_v10 = vld [vmem:[#allocation5 + $0x88] sm:$0xff]  ;;  %v134_v12 = vld [vmem:[#allocation5 + $0x80] sm:$0xff]  ;;  %s570_s1 = sshll.u32 %s814_s0, 4  ;;  %s571_s1 = int_to_ptr.vmem [resolvable:$true] %s570_s1 }
  0x1e   :  { %638 = vmatprep.subr.mxu0 %v811_v0  ;;  %665 = vmatprep.subr.mxu1 %v811_v0  ;;  %v44_v11 = vld [vmem:[#allocation5 + $0x28] sm:$0xff]  ;;  %v43_v13 = vld [vmem:[#allocation5 + $0x20] sm:$0xff]  ;;  %v42_v14 = vld [vmem:[#allocation5 + $0x18] sm:$0xff]  ;;  %s781_s21 = scalar_lea.vmem %s571_s1, 16  ;;  %s785_s22 = scalar_lea.vmem %s571_s1, 32 }
  0x1f   :  { %639 = vmatpush3.msra.mxu0 %v49_v2  ;;  %666 = vmatpush3.msra.mxu1 %v137_v6  ;;  %v41_v15 = vld [vmem:[#allocation5 + $0x10] sm:$0xff]  ;;  %v40_v16 = vld [vmem:[#allocation5 + $0x8] sm:$0xff]  ;;  %v39_v17 = vld [vmem:[#allocation5] sm:$0xff]  ;;  %p782_p10 = scmp.ne.s32.totalorder %s571_s1, %s781_s21  ;;  %p786_p11 = scmp.lt.s32.totalorder %s571_s1, %s571_s1 }
  0x20   :  { %640 = vmatprep.subr.mxu0 %v811_v0  ;;  %667 = vmatprep.subr.mxu1 %v811_v0  ;;  %v38_v18 = vld [vmem:[#allocation2] sm:$0xff]  ;;  %v132_v20 = vld [vmem:[#allocation5 + $0x70] sm:$0xff]  ;;  %v131_v21 = vld [vmem:[#allocation5 + $0x68] sm:$0xff]  ;;  %p787_p12 = scmp.lt.s32.totalorder %s785_s22, %s781_s21 }
  0x21   :  { %641 = vmatpush3.msra.mxu0 %v48_v3  ;;  %668 = vmatpush3.msra.mxu1 %v136_v8  ;;  %v133_v19 = vld [vmem:[#allocation5 + $0x78] sm:$0xff]  ;;  %v580_v22 = vld [vmem:[#allocation5 + $0x60] ss:$0 sm:$0xff]  ;;  %v226_v27 = vld [vmem:[#allocation5 + $0xe8] sm:$0xff] }
  0x22   :  { %642 = vmatprep.subr.mxu0 %v811_v0  ;;  %669 = vmatprep.subr.mxu1 %v811_v0  ;;  %v225_v28 = vld [vmem:[#allocation5 + $0xe0] sm:$0xff]  ;;  %v224_v29 = vld [vmem:[#allocation5 + $0xd8] sm:$0xff]  ;;  %v223_v30 = vld [vmem:[#allocation5 + $0xd0] sm:$0xff]  ;;  %p788_p13 = por %p787_p12, %p786_p11 }
  0x23   :  { %643 = vmatpush3.msra.mxu0 %v47_v4  ;;  %670 = vmatpush3.msra.mxu1 %v135_v10  ;;  %v222_v31 = vld [vmem:[#allocation5 + $0xc8] sm:$0xff]  ;;  %v221_v32 = vld [vmem:[#allocation5 + $0xc0] sm:$0xff]  ;;  %v220_v33 = vld [vmem:[#allocation5 + $0xb8] sm:$0xff] }
  0x24   :  { %644 = vmatprep.subr.mxu0 %v811_v0  ;;  %671 = vmatprep.subr.mxu1 %v811_v0  ;;  %v219_v34 = vld [vmem:[#allocation5 + $0xb0] sm:$0xff]  ;;  %v582_v36 = vld [vmem:[#allocation5 + $0xa8] ss:$0 sm:$0xff]  ;;  %v307_v42 = vld [vmem:[#allocation5 + $0x100] sm:$0xff]  ;;  %p789_p0 = pnand %p788_p13, %p782_p10 }
  0x25   :  { %645 = vmatpush3.msra.mxu0 %v46_v7  ;;  %672 = vmatpush3.msra.mxu1 %v134_v12  ;;  %v309_v35 = vld [vmem:[#allocation5 + $0x110] sm:$0xff]  ;;  %v308_v41 = vld [vmem:[#allocation5 + $0x108] sm:$0xff]  ;;  %v306_v43 = vld [vmem:[#allocation5 + $0xf8] sm:$0xff] }
  0x26   :  { %646 = vmatprep.subr.mxu0 %v811_v0  ;;  %673 = vmatprep.subr.mxu1 %v811_v0  ;;  %v584_v44 = vld [vmem:[#allocation5 + $0xf0] ss:$0 sm:$0xff]  ;;  %v393_v49 = vld [vmem:[#allocation5 + $0x138] sm:$0xff]  ;;  %v391_v51 = vld [vmem:[#allocation5 + $0x128] sm:$0xff] }
  0x27   :  { %647 = vmatpush3.msra.mxu0 %v45_v9  ;;  %674 = vmatpush3.msra.mxu1 %v133_v19  ;;  %v392_v50 = vld [vmem:[#allocation5 + $0x130] sm:$0xff]  ;;  %v390_v52 = vld [vmem:[#allocation5 + $0x120] sm:$0xff]  ;;  %v586_v53 = vld [vmem:[#allocation5 + $0x118] ss:$0 sm:$0xff] }
  0x28   :  { %648 = vmatprep.subr.mxu0 %v811_v0  ;;  %675 = vmatprep.subr.mxu1 %v811_v0  ;;  %v474_v58 = vld [vmem:[#allocation5 + $0x150] sm:$0x1]  ;;  %v588_v60 = vld [vmem:[#allocation5 + $0x140] ss:$0 sm:$0xff] }
  0x29   :  { %649 = vmatpush3.msra.mxu0 %v44_v11  ;;  %676 = vmatpush3.msra.mxu1 %v132_v20 }
  0x2a   :  { %650 = vmatprep.subr.mxu0 %v811_v0  ;;  %677 = vmatprep.subr.mxu1 %v811_v0 }
  0x2b   :  { %651 = vmatpush3.msra.mxu0 %v43_v13  ;;  %678 = vmatpush3.msra.mxu1 %v131_v21 }
  0x2c   :  { %652 = vmatprep.subr.mxu0 %v811_v0  ;;  %682 = vmatprep.subr.mxu1 %v811_v0 }
  0x2d   :  { %653 = vmatpush3.msra.mxu0 %v42_v14  ;;  %736 = vset.pattern.permute.xlu0 %v813_v59 }
  0x2e   :  { %654 = vmatprep.subr.mxu0 %v811_v0  ;;  %477 = vperm.xlu0 %736, %v474_v58  }
  0x2f   :  { %655 = vmatpush3.msra.mxu0 %v41_v15 }
  0x30   :  { %656 = vmatprep.subr.mxu0 %v811_v0 }
  0x31   :  { %657 = vmatpush3.msra.mxu0 %v40_v16 }
  0x32   :  { %658 = vmatprep.subr.mxu0 %v811_v0 }
  0x33   :  { %659 = vmatpush3.msra.mxu0 %v39_v17 }
  0x34   :  { %661 = vmatmul.mubr.msk.f32.vlgmr.msra.gmra.mxu0 %vm56_vm1, %v38_v18  ;;  %701 = vmatprep.subr.mxu0 %v811_v0 }
  0x35   :  { %709 = vmatprep.mubr.msk.f32.mxu0 %vm812_vm0, %v811_v0  ;;  %702 = vmatpush3.msra.mxu0 %v309_v35 }
  0x36   :  { %703 = vmatprep.subr.mxu0 %v811_v0 }
  0x37   :  { %704 = vmatpush3.msra.mxu0 %v308_v41 }
  0x38   :  { %705 = vmatprep.subr.mxu0 %v811_v0 }
  0x39   :  { %706 = vmatpush3.msra.mxu0 %v307_v42 }
  0x3a   :  { %707 = vmatprep.subr.mxu0 %v811_v0 }
  0x3b   :  { %708 = vmatpush3.msra.mxu0 %v306_v43 }
  0x3c   :  { %712 = vmatprep.subr.mxu0 %v811_v0 }
  0xa9   :  { %v478_v2 = vpop.permute.xlu0 %477 }
  0xf4   :  { %v126_v23 = vpop.f32.mrf.mxu0 }
  0xf5   :  { %v127_v24 = vadd.f32 %v580_v22, %v126_v23 }
  0xf6   :  { %v662_v25 = vpop.f32.mrf.mxu0 }
  0xf7   :  { %v130_v26 = vmax.f32 %v127_v24, 0.0 }
  0xf9   :  { %680 = vmatmul.mubr.msk.f32.vlgmr.msra.gmra.mxu1 %vm144_vm2, %v130_v26 }
  0xfa   :  { %683 = vmatpush3.msra.mxu1 %v226_v27  ;;  %698 = vmatprep.mubr.msk.f32.mxu1 %vm812_vm0, %v811_v0 }
  0xfb   :  { %684 = vmatprep.subr.mxu1 %v811_v0 }
  0xfc   :  { %685 = vmatpush3.msra.mxu1 %v225_v28 }
  0xfd   :  { %686 = vmatprep.subr.mxu1 %v811_v0 }
  0xfe   :  { %687 = vmatpush3.msra.mxu1 %v224_v29 }
  0xff   :  { %688 = vmatprep.subr.mxu1 %v811_v0 }
 0x100   :  { %689 = vmatpush3.msra.mxu1 %v223_v30 }
 0x101   :  { %690 = vmatprep.subr.mxu1 %v811_v0 }
 0x102   :  { %691 = vmatpush3.msra.mxu1 %v222_v31 }
 0x103   :  { %692 = vmatprep.subr.mxu1 %v811_v0 }
 0x104   :  { %693 = vmatpush3.msra.mxu1 %v221_v32 }
 0x105   :  { %694 = vmatprep.subr.mxu1 %v811_v0 }
 0x106   :  { %695 = vmatpush3.msra.mxu1 %v220_v33 }
 0x107   :  { %696 = vmatprep.subr.mxu1 %v811_v0 }
 0x108   :  { %697 = vmatpush3.msra.mxu1 %v219_v34 }
 0x109   :  { %723 = vmatprep.subr.mxu1 %v811_v0 }
 0x1b9   :  { %v214_v37 = vpop.f32.mrf.mxu1 }
 0x1ba   :  { %v215_v38 = vadd.f32 %v582_v36, %v214_v37 }
 0x1bb   :  { %v681_v39 = vpop.f32.mrf.mxu1 }
 0x1bc   :  { %v218_v40 = vmax.f32 %v215_v38, 0.0 }
 0x1be   :  { %699 = vmatmul.mubr.msk.f32.vlgmr.msra.gmra.mxu1 %vm144_vm2, %v218_v40 }
 0x1bf   :  { %725 = vmatprep.mubr.msk.f32.mxu1 %vm812_vm0, %v811_v0 }
 0x27e   :  { %v301_v45 = vpop.f32.mrf.mxu1 }
 0x27f   :  { %v302_v46 = vadd.f32 %v584_v44, %v301_v45 }
 0x280   :  { %v700_v47 = vpop.f32.mrf.mxu1 }
 0x281   :  { %v305_v48 = vmax.f32 %v302_v46, 0.0 }
 0x283   :  { %710 = vmatmul.mubr.msk.f32.vlgmr.msra.gmra.mxu0 %vm315_vm3, %v305_v48 }
 0x284   :  { %713 = vmatpush3.msra.mxu0 %v393_v49  ;;  %720 = vmatprep.mubr.msk.f32.mxu0 %vm812_vm0, %v811_v0 }
 0x285   :  { %714 = vmatprep.subr.mxu0 %v811_v0 }
 0x286   :  { %715 = vmatpush3.msra.mxu0 %v392_v50 }
 0x287   :  { %716 = vmatprep.subr.mxu0 %v811_v0 }
 0x288   :  { %717 = vmatpush3.msra.mxu0 %v391_v51 }
 0x289   :  { %718 = vmatprep.subr.mxu0 %v811_v0  ;;  %v473_v0 = vld [vmem:[#allocation5 + $0x148] sm:$0x1] }
 0x28a   :  { %719 = vmatpush3.msra.mxu0 %v390_v52 }
 0x343   :  { %v385_v54 = vpop.f32.mrf.mxu0 }
 0x344   :  { %v386_v55 = vadd.f32 %v586_v53, %v385_v54 }
 0x345   :  { %v711_v56 = vpop.f32.mrf.mxu0 }
 0x346   :  { %v389_v57 = vmax.f32 %v386_v55, 0.0 }
 0x348   :  { %721 = vmatmul.mubr.msk.f32.vlgmr.msra.gmra.mxu0 %vm315_vm3, %v389_v57 }
 0x408   :  { %v468_v61 = vpop.f32.mrf.mxu0 }
 0x409   :  { %v469_v62 = vadd.f32 %v588_v60, %v468_v61 }
 0x40a   :  { %v722_v63 = vpop.f32.mrf.mxu0 }
 0x40b   :  { %v472_v1 = vmax.f32 %v469_v62, 0.0 }
 0x40d   :  { %724 = vmatpush3.xpose.msk.msra.mxu1 %vm315_vm3, %v472_v1 }
 0x410   :  { %726 = vmatmul.mubr.msk.f32.vlgmr.msra.gmra.mxu1 %vm315_vm3, %v473_v0 }
 0x4d0   :  { %v552_v3 = vpop.f32.mrf.mxu1 }
 0x4d1   :  { %v553_v4 = vadd.f32 %v552_v3, %v478_v2 }
 0x4d2   :  { %v727_v5 = vpop.f32.mrf.mxu1 }
 0x4d3   :  { %v592_v6 = vmul.f32 -1.442695, %v553_v4 }
 0x4d5   :  { %737 = vpow2.f32 %v592_v6 }
 0x4e2   :  { %v738_v7 = vpop.eup %737 }
 0x4e3   :  { %v559_v8 = vadd.f32 1.0, %v738_v7 }
 0x4e5   :  { %739 = vrcp.f32 %v559_v8 }
 0x4f2   :  { %v740_v9 = vpop.eup %739 }
 0x4f3   :  { %563 = vst.msk [vmem:[#allocation7] sm:$0x1] %vm562_vm4, %v740_v9 }
 0x4f4   :  { %792 = shalt.err (!%p789_p0)
}
 0x4f5   :  { %573 = dma.vmem_to_hbm [thread:$0]  %s571_s1, 16, %s896_s2, [#allocation4]  }
 0x4f6   :  { %805 = dma.done.wait [#allocation4], 16  }
 0x4f7   :  { %806 = vsyncadd [#allocation4], 4294967280 }
 0x4f8   :  { %577 = vsyncpa [#allocation3], 1 }
 0x4f9   :  { %578 = vsyncpa [#allocation6], 1 }
 0x4fa   :  { %579 = vsyncpa [#allocation4], 1 }

</bundles_post_ra>
